<compile_context>
chip_gen: v7x
topology: tpu7x:2x2x1
jax: 0.10.0
libtpu: 0.0.40
codegen_flags: <defaults>
</compile_context>

<pallas_src>
import functools

import jax
import jax.numpy as jnp
from jax.experimental import pallas as pl
from jax.experimental.pallas import tpu as pltpu


def _metrics_kernel(pred_ref, tgt_ref, acc_sum_ref, mae_sum_ref, *, batch, block_b):
    pred = pred_ref[...]            # [TB, S1, A] native dtype
    tgt = tgt_ref[...]              # [TB, 1,  A] native dtype
    tb, s1, a = pred.shape

    # argmax over the action dim (first occurrence), via max + iota-min so it
    # lowers to one max-reduce + one min-reduce on the XLU.
    p_iota = jax.lax.broadcasted_iota(jnp.int32, pred.shape, 2)
    p_max = jnp.max(pred, axis=-1, keepdims=True)
    p_arg = jnp.min(jnp.where(pred == p_max, p_iota, a), axis=-1)    # [TB, S1] int32

    t_iota = jax.lax.broadcasted_iota(jnp.int32, tgt.shape, 2)
    t_max = jnp.max(tgt, axis=-1, keepdims=True)
    t_arg = jnp.min(jnp.where(tgt == t_max, t_iota, a), axis=-1)     # [TB, 1] int32

    diff = p_arg - t_arg                                             # [TB, S1] int32
    acc_f = (diff == 0).astype(jnp.float32)
    mae_f = jnp.abs(diff).astype(jnp.float32)

    # Mask padded batch rows of a partial last block out of the sums.
    b_iota = jax.lax.broadcasted_iota(jnp.int32, diff.shape, 0)
    valid = (pl.program_id(0) * block_b + b_iota) < batch
    acc_f = jnp.where(valid, acc_f, 0.0)
    mae_f = jnp.where(valid, mae_f, 0.0)

    # Fused partial sums (one per metric) written to this block's output slot.
    acc_sum_ref[...] = jnp.sum(acc_f, keepdims=True).reshape(1, 1, 1)
    mae_sum_ref[...] = jnp.sum(mae_f, keepdims=True).reshape(1, 1, 1)


def bitflip_metrics(targets, predictions, *, block_b=None):
    """targets: [B, A], predictions: [B, S+1, A] -> dict of scalar metrics."""
    b, s1, a = predictions.shape
    assert targets.shape == (b, a)

    itemsize = jnp.dtype(predictions.dtype).itemsize
    if block_b is None:
        # ~2 MiB prediction block: safe for v7x's 64 MiB VMEM even with
        # double-buffering and the iota/select temporaries; still >= hundreds
        # of rows for typical shapes so per-step overhead is hidden.
        budget = 2 * 1024 * 1024
        block_b = max(1, min(b, budget // max(1, s1 * a * itemsize)))
    num_blocks = pl.cdiv(b, block_b)

    # Targets as [B, 1, A] so the tiled BlockSpec keeps its last two dims
    # equal to the full array dims (no (8,128) divisibility concerns).
    tgt3 = targets.reshape(b, 1, a)

    kernel = functools.partial(_metrics_kernel, batch=b, block_b=block_b)

    acc_part, mae_part = pl.pallas_call(
        kernel,
        out_shape=(
            jax.ShapeDtypeStruct((num_blocks, 1, 1), jnp.float32),
            jax.ShapeDtypeStruct((num_blocks, 1, 1), jnp.float32),
        ),
        grid=(num_blocks,),
        in_specs=[
            pl.BlockSpec((block_b, s1, a), lambda i: (i, 0, 0)),  # predictions
            pl.BlockSpec((block_b, 1, a), lambda i: (i, 0, 0)),   # targets
        ],
        out_specs=(
            pl.BlockSpec((1, 1, 1), lambda i: (i, 0, 0)),
            pl.BlockSpec((1, 1, 1), lambda i: (i, 0, 0)),
        ),
        compiler_params=pltpu.CompilerParams(
            dimension_semantics=("parallel",)),
    )(predictions, tgt3)

    inv_count = 1.0 / float(b * s1)
    return {
        'accuracy': jnp.sum(acc_part) * inv_count,
        'x_mae': jnp.sum(mae_part) * inv_count,
    }


def _reference(targets, predictions):
    p = jnp.argmax(predictions, axis=-1)
    t = jnp.argmax(targets, axis=-1)
    acc = (p == t[:, None]).astype(jnp.float32)
    mae = jnp.abs(p - t[:, None]).astype(jnp.float32)
    return {'accuracy': acc.mean(), 'x_mae': mae.mean()}


if __name__ == "__main__":
    key = jax.random.PRNGKey(0)
    k1, k2, k3, k4 = jax.random.split(key, 4)

    # Test 1: small shapes matching the module spec (f32, single block).
    B, SEQ, A = 2, 8, 32            # predictions: [B, SEQ+1, A], targets: [B, A]
    predictions = jax.random.normal(k1, (B, SEQ + 1, A), dtype=jnp.float32)
    targets = jax.random.normal(k2, (B, A), dtype=jnp.float32)

    out = bitflip_metrics(targets, predictions)
    jax.block_until_ready(out)
    ref = _reference(targets, predictions)
    assert abs(float(out['accuracy']) - float(ref['accuracy'])) < 1e-6
    assert abs(float(out['x_mae']) - float(ref['x_mae'])) < 1e-6

    # Test 2: bf16 inputs (no wrapper upcast), forced small batch tile so the
    # grid has several steps including a partial (masked) last block.
    B2, SEQ2, A2 = 10, 6, 128
    pred2 = jax.random.normal(k3, (B2, SEQ2 + 1, A2), dtype=jnp.float32).astype(jnp.bfloat16)
    tgt2 = jax.random.normal(k4, (B2, A2), dtype=jnp.float32).astype(jnp.bfloat16)

    out2 = bitflip_metrics(tgt2, pred2, block_b=4)   # grid = 3, last block partial
    jax.block_until_ready(out2)
    ref2 = _reference(tgt2, pred2)
    assert abs(float(out2['accuracy']) - float(ref2['accuracy'])) < 1e-5
    assert abs(float(out2['x_mae']) - float(ref2['x_mae'])) < 1e-4

    print("KERNEL_OK")
</pallas_src>

<mosaic_0001>
module attributes {stable_mosaic.version = 11 : i64} {
  func.func @_metrics_kernel(%arg0: i32, %arg1: memref<2x9x32xf32, #tpu.memory_space<vmem>>, %arg2: memref<2x1x32xf32, #tpu.memory_space<vmem>>, %arg3: memref<1x1x1xf32, #tpu.memory_space<vmem>>, %arg4: memref<1x1x1xf32, #tpu.memory_space<vmem>>) attributes {dimension_semantics = [#tpu.dimension_semantics<parallel>], iteration_bounds = array<i64: 1>, scalar_prefetch = 0 : i64, scratch_operands = 0 : i64, tpu.core_type = #tpu.core_type<tc>, window_params = [{transform_indices = @transform_0, window_bounds = array<i64: 2, 9, 32>}, {transform_indices = @transform_1, window_bounds = array<i64: 2, 1, 32>}, {transform_indices = @transform_2, window_bounds = array<i64: 1, 1, 1>}, {transform_indices = @transform_3, window_bounds = array<i64: 1, 1, 1>}]} {
    %c0 = arith.constant 0 : index
    %c0_0 = arith.constant 0 : index
    %c0_1 = arith.constant 0 : index
    %0 = vector.load %arg1[%c0, %c0_0, %c0_1] : memref<2x9x32xf32, #tpu.memory_space<vmem>>, vector<2x9x32xf32>
    %c0_2 = arith.constant 0 : index
    %c0_3 = arith.constant 0 : index
    %c0_4 = arith.constant 0 : index
    %1 = vector.load %arg2[%c0_2, %c0_3, %c0_4] : memref<2x1x32xf32, #tpu.memory_space<vmem>>, vector<2x1x32xf32>
    %2 = tpu.iota {dimensions = array<i32: 2>} : vector<2x9x32xi32>
    %cst = arith.constant dense<0xFF800000> : vector<2x9xf32>
    %3 = vector.multi_reduction <maximumf>, %0, %cst [2] : vector<2x9x32xf32> to vector<2x9xf32>
    %4 = vector.shape_cast %3 : vector<2x9xf32> to vector<2x9x1xf32>
    %5 = vector.broadcast %4 : vector<2x9x1xf32> to vector<2x9x32xf32>
    %6 = arith.cmpf oeq, %0, %5 : vector<2x9x32xf32>
    %c32_i32 = arith.constant 32 : i32
    %7 = vector.broadcast %c32_i32 : i32 to vector<2x9x32xi32>
    %8 = arith.select %6, %2, %7 : vector<2x9x32xi1>, vector<2x9x32xi32>
    %cst_5 = arith.constant dense<2147483647> : vector<2x9xi32>
    %9 = vector.multi_reduction <minsi>, %8, %cst_5 [2] : vector<2x9x32xi32> to vector<2x9xi32>
    %10 = tpu.iota {dimensions = array<i32: 2>} : vector<2x1x32xi32>
    %cst_6 = arith.constant dense<0xFF800000> : vector<2x1xf32>
    %11 = vector.multi_reduction <maximumf>, %1, %cst_6 [2] : vector<2x1x32xf32> to vector<2x1xf32>
    %12 = vector.shape_cast %11 : vector<2x1xf32> to vector<2x1x1xf32>
    %13 = vector.broadcast %12 : vector<2x1x1xf32> to vector<2x1x32xf32>
    %14 = arith.cmpf oeq, %1, %13 : vector<2x1x32xf32>
    %c32_i32_7 = arith.constant 32 : i32
    %15 = vector.broadcast %c32_i32_7 : i32 to vector<2x1x32xi32>
    %16 = arith.select %14, %10, %15 : vector<2x1x32xi1>, vector<2x1x32xi32>
    %cst_8 = arith.constant dense<2147483647> : vector<2x1xi32>
    %17 = vector.multi_reduction <minsi>, %16, %cst_8 [2] : vector<2x1x32xi32> to vector<2x1xi32>
    %18 = vector.broadcast %17 : vector<2x1xi32> to vector<2x9xi32>
    %19 = arith.subi %9, %18 : vector<2x9xi32>
    %c0_i32 = arith.constant 0 : i32
    %20 = vector.broadcast %c0_i32 : i32 to vector<2x9xi32>
    %21 = arith.cmpi eq, %19, %20 : vector<2x9xi32>
    %22 = arith.extui %21 : vector<2x9xi1> to vector<2x9xi32>
    %23 = arith.sitofp %22 : vector<2x9xi32> to vector<2x9xf32>
    %24 = math.absi %19 : vector<2x9xi32>
    %25 = arith.sitofp %24 : vector<2x9xi32> to vector<2x9xf32>
    %26 = tpu.iota {dimensions = array<i32: 0>} : vector<2x9xi32>
    %c2_i32 = arith.constant 2 : i32
    %27 = arith.muli %arg0, %c2_i32 : i32
    %28 = vector.broadcast %27 : i32 to vector<2x9xi32>
    %29 = arith.addi %28, %26 : vector<2x9xi32>
    %c2_i32_9 = arith.constant 2 : i32
    %30 = vector.broadcast %c2_i32_9 : i32 to vector<2x9xi32>
    %31 = arith.cmpi slt, %29, %30 : vector<2x9xi32>
    %cst_10 = arith.constant 0.000000e+00 : f32
    %32 = vector.broadcast %cst_10 : f32 to vector<2x9xf32>
    %33 = arith.select %31, %23, %32 : vector<2x9xi1>, vector<2x9xf32>
    %cst_11 = arith.constant 0.000000e+00 : f32
    %34 = vector.broadcast %cst_11 : f32 to vector<2x9xf32>
    %35 = arith.select %31, %25, %34 : vector<2x9xi1>, vector<2x9xf32>
    %36 = vector.shape_cast %33 : vector<2x9xf32> to vector<1x2x9xf32>
    %cst_12 = arith.constant dense<0.000000e+00> : vector<1xf32>
    %37 = vector.multi_reduction <add>, %36, %cst_12 [1, 2] : vector<1x2x9xf32> to vector<1xf32>
    %38 = vector.shape_cast %37 : vector<1xf32> to vector<1x1x1xf32>
    %39 = vector.extract %38[0, 0, 0] : f32 from vector<1x1x1xf32>
    %40 = vector.broadcast %39 : f32 to vector<1x1xf32>
    %41 = vector.shape_cast %40 : vector<1x1xf32> to vector<1x1x1xf32>
    %c0_13 = arith.constant 0 : index
    %c0_14 = arith.constant 0 : index
    %c0_15 = arith.constant 0 : index
    %42 = vector.load %arg3[%c0_13, %c0_14, %c0_15] : memref<1x1x1xf32, #tpu.memory_space<vmem>>, vector<1x1x1xf32>
    tpu.vector_store %arg3[%c0_13, %c0_14, %c0_15], %41 {strides = array<i32>} : memref<1x1x1xf32, #tpu.memory_space<vmem>>, vector<1x1x1xf32>,
    %43 = vector.shape_cast %35 : vector<2x9xf32> to vector<1x2x9xf32>
    %cst_16 = arith.constant dense<0.000000e+00> : vector<1xf32>
    %44 = vector.multi_reduction <add>, %43, %cst_16 [1, 2] : vector<1x2x9xf32> to vector<1xf32>
    %45 = vector.shape_cast %44 : vector<1xf32> to vector<1x1x1xf32>
    %46 = vector.extract %45[0, 0, 0] : f32 from vector<1x1x1xf32>
    %47 = vector.broadcast %46 : f32 to vector<1x1xf32>
    %48 = vector.shape_cast %47 : vector<1x1xf32> to vector<1x1x1xf32>
    %c0_17 = arith.constant 0 : index
    %c0_18 = arith.constant 0 : index
    %c0_19 = arith.constant 0 : index
    %49 = vector.load %arg4[%c0_17, %c0_18, %c0_19] : memref<1x1x1xf32, #tpu.memory_space<vmem>>, vector<1x1x1xf32>
    tpu.vector_store %arg4[%c0_17, %c0_18, %c0_19], %48 {strides = array<i32>} : memref<1x1x1xf32, #tpu.memory_space<vmem>>, vector<1x1x1xf32>,
    return
  }
  func.func @transform_0(%arg0: i32) -> (i32, i32, i32) {
    %c0_i32 = arith.constant 0 : i32
    %c0_i32_0 = arith.constant 0 : i32
    %c0_i32_1 = arith.constant 0 : i32
    return %arg0, %c0_i32, %c0_i32_0 : i32, i32, i32
  }
  func.func @transform_1(%arg0: i32) -> (i32, i32, i32) {
    %c0_i32 = arith.constant 0 : i32
    %c0_i32_0 = arith.constant 0 : i32
    %c0_i32_1 = arith.constant 0 : i32
    return %arg0, %c0_i32, %c0_i32_0 : i32, i32, i32
  }
  func.func @transform_2(%arg0: i32) -> (i32, i32, i32) {
    %c0_i32 = arith.constant 0 : i32
    %c0_i32_0 = arith.constant 0 : i32
    %c0_i32_1 = arith.constant 0 : i32
    return %arg0, %c0_i32, %c0_i32_0 : i32, i32, i32
  }
  func.func @transform_3(%arg0: i32) -> (i32, i32, i32) {
    %c0_i32 = arith.constant 0 : i32
    %c0_i32_0 = arith.constant 0 : i32
    %c0_i32_1 = arith.constant 0 : i32
    return %arg0, %c0_i32, %c0_i32_0 : i32, i32, i32
  }
}

</mosaic_0001>

<bundles_post_ra>
// kernel: tpu_custom_call.1
= control target key start
LH: loop header
LB: loop body
LE: loop exit
PB: predicated region body
PF: predicated region fallthrough
CT: control target
= control target key end

     0   :  { %9 = vsyncpa [#allocation3], 0  ;;  %vm27_vm0 = vcmask 253952   ;;  %vm23_vm1 = vcmask 261120   ;;  %s464_s0 = inlined_call_operand.vmem [shape: f32[2,9,32], index: 0, kind: input, shape index: {}]   ;;  %s465_s1 = inlined_call_operand.vmem [shape: f32[2,1,32], index: 1, kind: input, shape index: {}]   ;;  %s466_s2 = inlined_call_operand.hbm [shape: f32[1,1,1], index: 2, kind: output, shape index: {0}]   ;;  %s467_s3 = inlined_call_operand.hbm [shape: f32[1,1,1], index: 3, kind: output, shape index: {1}]  }
   0x1   :  { %v19_v0 = vld [vmem:[%s465_s1] sm:$0x1]  ;;  %v20_v1 = vld [vmem:[%s465_s1 + $0x1] sm:$0x1]  ;;  %v16_v4 = vld [vmem:[%s464_s0 + $0x8] sm:$0x1] }
   0x2   :  { %v15_v2 = vld [vmem:[%s464_s0] sm:$0xff]  ;;  %v105_v3 = vsel %vm27_vm0, %v19_v0, -inf  ;;  %v108_v6 = vsel %vm27_vm0, %v20_v1, -inf }
   0x3   :  { %106 = vmax.xlane.f32.xlu0 %v105_v3  ;;  %v24_v5 = vsel %vm23_vm1, %v15_v2, -inf }
   0x4   :  { %25 = vmax.xlane.f32.xlu1 %v24_v5 }
   0x5   :  { %10 = vsyncpa [#allocation5], 0  ;;  %v17_v7 = vld [vmem:[%s464_s0 + $0x10] sm:$0xff]  ;;  %v28_v8 = vsel %vm27_vm0, %v16_v4, -inf  ;;  %v18_v9 = vld [vmem:[%s464_s0 + $0x18] sm:$0x1]  ;;  %v21_v12 = vlaneseq }
   0x6   :  { %v31_v10 = vsel %vm23_vm1, %v17_v7, -inf  ;;  %v34_v11 = vsel %vm27_vm0, %v18_v9, -inf  ;;  %s362_s0 = smov [#allocation2]   ;;  %s363_s25 = smov [#allocation4]  }
   0x7   :  { %109 = vmax.xlane.f32.xlu0 %v108_v6  ;;  %v409_v13 = vand.u32 127, %v21_v12  ;;  %v424_v5 = vshrl.u32 %v21_v12, 7  ;;  %s276_s23 = sshll.u32 %s362_s0, 4  ;;  %s286_s26 = sshll.u32 %s363_s25, 4  ;;  %s277_s23 = int_to_ptr.vmem [resolvable:$true] %s276_s23  ;;  %s287_s26 = int_to_ptr.vmem [resolvable:$true] %s286_s26 }
   0x8   :  { %29 = vmax.xlane.f32.xlu1 %v28_v8  ;;  %s313_s27 = scalar_lea.vmem %s277_s23, 16  ;;  %s317_s28 = scalar_lea.vmem %s277_s23, 32 }
   0x9   :  { %p314_p0 = scmp.ne.s32.totalorder %s277_s23, %s313_s27  ;;  %p318_p1 = scmp.lt.s32.totalorder %s277_s23, %s277_s23 }
   0xa   :  { %p319_p2 = scmp.lt.s32.totalorder %s317_s28, %s313_s27 }
   0xb   :  { %32 = vmax.xlane.f32.xlu0 %v31_v10 }
   0xc   :  { %35 = vmax.xlane.f32.xlu1 %v34_v11  ;;  %v147_v11 = vsub.s32 0, %v424_v5  ;;  %p320_p3 = por %p319_p2, %p318_p1 }
   0xe   :  { %p321_p4 = pnand %p320_p3, %p314_p0 }
  0x90   :  { %v107_v14 = vpop.xlane.xlu0 %106 }
  0x91   :  { %vm111_vm2 = vcmp.eq.f32.partialorder %v19_v0, %v107_v14  ;;  %v26_v15 = vpop.xlane.xlu1 %25 }
  0x92   :  { %v113_v16 = vsel %vm111_vm2, %v409_v13, 32  ;;  %vm37_vm3 = vcmp.eq.f32.partialorder %v15_v2, %v26_v15 }
  0x93   :  { %v115_v17 = vsel %vm27_vm0, %v113_v16, 2147483647  ;;  %v41_v18 = vsel %vm37_vm3, %v409_v13, 32  ;;  %vm215_vm3 = vcmask 1041409  }
  0x94   :  { %v110_v19 = vpop.xlane.xlu0 %109  ;;  %v45_v20 = vsel %vm23_vm1, %v41_v18, 2147483647  ;;  %v117_v21 = vshra.s32 %v115_v17, 16  ;;  %v116_v44 = vand.u32 65535, %v115_v17 }
  0x95   :  { %vm112_vm4 = vcmp.eq.f32.partialorder %v20_v1, %v110_v19  ;;  %v30_v22 = vpop.xlane.xlu1 %29  ;;  %v47_v23 = vshra.s32 %v45_v20, 16  ;;  %v46_v47 = vand.u32 65535, %v45_v20 }
  0x96   :  { %v114_v24 = vsel %vm112_vm4, %v409_v13, 32  ;;  %v119_v25 = vcvt.s32.f32 %v117_v21  ;;  %vm38_vm5 = vcmp.eq.f32.partialorder %v16_v4, %v30_v22  ;;  %v118_v46 = vcvt.s32.f32 %v116_v44 }
  0x97   :  { %v130_v26 = vsel %vm27_vm0, %v114_v24, 2147483647  ;;  %v42_v27 = vsel %vm38_vm5, %v409_v13, 32  ;;  %v49_v31 = vcvt.s32.f32 %v47_v23  ;;  %v48_v52 = vcvt.s32.f32 %v46_v47 }
  0x98   :  { %120 = vmin.xlane.f32.xlu0 %v119_v25  ;;  %v33_v28 = vpop.xlane.xlu0 %32  ;;  %v60_v29 = vsel %vm27_vm0, %v42_v27, 2147483647  ;;  %v132_v30 = vshra.s32 %v130_v26, 16  ;;  %v131_v48 = vand.u32 65535, %v130_v26  ;;  %vm190_vm4 = vcmp.lt.s32.totalorder %v424_v5, 2 }
  0x99   :  { %vm39_vm6 = vcmp.eq.f32.partialorder %v17_v7, %v33_v28  ;;  %v36_v32 = vpop.xlane.xlu1 %35  ;;  %v62_v33 = vshra.s32 %v60_v29, 16  ;;  %v61_v55 = vand.u32 65535, %v60_v29  ;;  %v199_v28 = vadd.s32 4294967288, %v409_v13 }
  0x9a   :  { %v43_v34 = vsel %vm39_vm6, %v409_v13, 32  ;;  %v134_v35 = vcvt.s32.f32 %v132_v30  ;;  %vm40_vm7 = vcmp.eq.f32.partialorder %v18_v9, %v36_v32  ;;  %v133_v53 = vcvt.s32.f32 %v131_v48 }
  0x9b   :  { %v75_v36 = vsel %vm23_vm1, %v43_v34, 2147483647  ;;  %v44_v37 = vsel %vm40_vm7, %v409_v13, 32  ;;  %v64_v40 = vcvt.s32.f32 %v62_v33  ;;  %v63_v61 = vcvt.s32.f32 %v61_v55 }
  0x9c   :  { %135 = vmin.xlane.f32.xlu1 %v134_v35  ;;  %50 = vmin.xlane.f32.xlu0 %v49_v31  ;;  %v90_v38 = vsel %vm27_vm0, %v44_v37, 2147483647  ;;  %v77_v39 = vshra.s32 %v75_v36, 16  ;;  %v76_v54 = vand.u32 65535, %v75_v36  ;;  %vm204_vm1 = vcmask 130112  }
  0x9d   :  { %v92_v41 = vshra.s32 %v90_v38, 16  ;;  %v91_v62 = vand.u32 65535, %v90_v38  ;;  %vm244_vm5 = vcmask 66560   ;;  %vm256_vm6 = vcmask 0  }
  0x9e   :  { %v79_v42 = vcvt.s32.f32 %v77_v39  ;;  %v78_v60 = vcvt.s32.f32 %v76_v54  ;;  %v197_v39 = vsub.s32 %v409_v13, %v424_v5 }
  0x9f   :  { %v94_v43 = vcvt.s32.f32 %v92_v41  ;;  %v93_v2 = vcvt.s32.f32 %v91_v62 }
  0xa0   :  { %80 = vmin.xlane.f32.xlu0 %v79_v42  ;;  %65 = vmin.xlane.f32.xlu1 %v64_v40 }
  0xa4   :  { %95 = vmin.xlane.f32.xlu1 %v94_v43 }
 0x125   :  { %v121_v45 = vpop.xlane.xlu0 %120 }
 0x126   :  { %vm122_vm8 = vcmp.eq.f32.partialorder %v119_v25, %v121_v45  ;;  %v127_v4 = vcvt.f32.s32 %v121_v45 }
 0x127   :  { %v123_v49 = vsel %vm122_vm8, %v118_v46, inf  ;;  %v361_v46 = vmov 0.0  }
 0x128   :  { %124 = vmin.xlane.f32.xlu0 %v123_v49  ;;  %v128_v8 = vshll.u32 %v127_v4, 16 }
 0x129   :  { %v51_v50 = vpop.xlane.xlu0 %50  ;;  %v136_v51 = vpop.xlane.xlu1 %135 }
 0x12a   :  { %vm52_vm9 = vcmp.eq.f32.partialorder %v49_v31, %v51_v50  ;;  %vm137_vm10 = vcmp.eq.f32.partialorder %v134_v35, %v136_v51  ;;  %v57_v6 = vcvt.f32.s32 %v51_v50  ;;  %v142_v9 = vcvt.f32.s32 %v136_v51 }
 0x12b   :  { %v53_v56 = vsel %vm52_vm9, %v48_v52, inf  ;;  %v138_v57 = vsel %vm137_vm10, %v133_v53, inf }
 0x12c   :  { %54 = vmin.xlane.f32.xlu0 %v53_v56  ;;  %139 = vmin.xlane.f32.xlu1 %v138_v57  ;;  %v58_v15 = vshll.u32 %v57_v6, 16  ;;  %v143_v19 = vshll.u32 %v142_v9, 16 }
 0x12d   :  { %v81_v58 = vpop.xlane.xlu0 %80  ;;  %v66_v59 = vpop.xlane.xlu1 %65 }
 0x12e   :  { %vm82_vm11 = vcmp.eq.f32.partialorder %v79_v42, %v81_v58  ;;  %vm67_vm12 = vcmp.eq.f32.partialorder %v64_v40, %v66_v59  ;;  %v87_v16 = vcvt.f32.s32 %v81_v58  ;;  %v72_v20 = vcvt.f32.s32 %v66_v59 }
 0x12f   :  { %v83_v63 = vsel %vm82_vm11, %v78_v60, inf  ;;  %v68_v0 = vsel %vm67_vm12, %v63_v61, inf  ;;  %v202_v40 = vsub.s32 %v199_v28, %v424_v5 }
 0x130   :  { %84 = vmin.xlane.f32.xlu0 %v83_v63  ;;  %69 = vmin.xlane.f32.xlu1 %v68_v0  ;;  %v88_v25 = vshll.u32 %v87_v16, 16  ;;  %v73_v29 = vshll.u32 %v72_v20, 16 }
 0x131   :  { %v96_v1 = vpop.xlane.xlu1 %95 }
 0x132   :  { %vm97_vm13 = vcmp.eq.f32.partialorder %v94_v43, %v96_v1  ;;  %v102_v33 = vcvt.f32.s32 %v96_v1 }
 0x133   :  { %v98_v3 = vsel %vm97_vm13, %v93_v2, inf }
 0x134   :  { %99 = vmin.xlane.f32.xlu1 %v98_v3  ;;  %v103_v45 = vshll.u32 %v102_v33, 16 }
 0x1b5   :  { %v125_v7 = vpop.xlane.xlu0 %124 }
 0x1b6   :  { %v126_v10 = vcvt.f32.s32 %v125_v7 }
 0x1b8   :  { %v129_v14 = vadd.s32 %v128_v8, %v126_v10 }
 0x1b9   :  { %v55_v17 = vpop.xlane.xlu0 %54  ;;  %v140_v18 = vpop.xlane.xlu1 %139 }
 0x1ba   :  { %v56_v21 = vcvt.f32.s32 %v55_v17  ;;  %v141_v22 = vcvt.f32.s32 %v140_v18  ;;  %v148_v23 = vrot.slane %v129_v14, %v147_v11 }
 0x1bc   :  { %v59_v24 = vadd.s32 %v58_v15, %v56_v21  ;;  %v144_v12 = vadd.s32 %v143_v19, %v141_v22 }
 0x1bd   :  { %v85_v26 = vpop.xlane.xlu0 %84  ;;  %v70_v27 = vpop.xlane.xlu1 %69 }
 0x1be   :  { %v153_v30 = vsub.s32 %v59_v24, %v148_v23  ;;  %v86_v31 = vcvt.f32.s32 %v85_v26  ;;  %v71_v32 = vcvt.f32.s32 %v70_v27  ;;  %v152_v34 = vrot.slane %v144_v12, %v147_v11 }
 0x1c0   :  { %vm157_vm14 = vcmp.eq.s32.totalorder %v153_v30, 0  ;;  %v170_v35 = vsub.s32 0, %v153_v30  ;;  %v89_v36 = vadd.s32 %v88_v25, %v86_v31  ;;  %v74_v37 = vadd.s32 %v73_v29, %v71_v32 }
 0x1c1   :  { %v100_v38 = vpop.xlane.xlu1 %99  ;;  %v298_v47 = vsel %vm157_vm14, 1.0, %v361_v46 }
 0x1c2   :  { %v302_v41 = vmin.u32 %v170_v35, %v153_v30  ;;  %v155_v42 = vsub.s32 %v89_v36, %v152_v34  ;;  %v154_v43 = vsub.s32 %v74_v37, %v148_v23  ;;  %v101_v44 = vcvt.f32.s32 %v100_v38 }
 0x1c3   :  { %v198_v53 = vrot.slane %v298_v47, %v197_v39 }
 0x1c4   :  { %vm159_vm15 = vcmp.eq.s32.totalorder %v155_v42, 0  ;;  %v176_v48 = vsub.s32 0, %v155_v42  ;;  %vm158_vm0 = vcmp.eq.s32.totalorder %v154_v43, 0  ;;  %v173_v50 = vsub.s32 0, %v154_v43 }
 0x1c5   :  { %v299_v49 = vsel %vm158_vm0, 1.0, %v361_v46  ;;  %v104_v51 = vadd.s32 %v103_v45, %v101_v44  ;;  %v181_v52 = vcvt.s32.f32 %v302_v41  ;;  %v300_v13 = vsel %vm159_vm15, 1.0, %v361_v46 }
 0x1c6   :  { %v203_v54 = vrot.slane %v299_v49, %v202_v40  ;;  %v304_v55 = vmin.u32 %v176_v48, %v155_v42  ;;  %v303_v56 = vmin.u32 %v173_v50, %v154_v43  ;;  %v209_v62 = vrot.slane %v300_v13, %v197_v39 }
 0x1c7   :  { %v156_v57 = vsub.s32 %v104_v51, %v152_v34  ;;  %v226_v63 = vrot.slane %v181_v52, %v197_v39 }
 0x1c8   :  { %v205_v58 = vsel %vm204_vm1, %v203_v54, %v198_v53  ;;  %v182_v59 = vcvt.s32.f32 %v303_v56  ;;  %v183_v0 = vcvt.s32.f32 %v304_v55 }
 0x1c9   :  { %vm160_vm2 = vcmp.eq.s32.totalorder %v156_v57, 0  ;;  %v179_v60 = vsub.s32 0, %v156_v57 }
 0x1ca   :  { %v301_v61 = vsel %vm160_vm2, 1.0, %v361_v46  ;;  %v230_v3 = vrot.slane %v182_v59, %v202_v40  ;;  %v235_v10 = vrot.slane %v183_v0, %v197_v39 }
 0x1cb   :  { %v305_v1 = vmin.u32 %v179_v60, %v156_v57  ;;  %v213_v2 = vrot.slane %v301_v61, %v202_v40 }
 0x1cc   :  { %v231_v7 = vsel %vm204_vm1, %v230_v3, %v226_v63 }
 0x1cd   :  { %v184_v4 = vcvt.s32.f32 %v305_v1  ;;  %v214_v6 = vsel %vm204_vm1, %v213_v2, %v209_v62 }
 0x1ce   :  { %v216_v8 = vsel %vm215_vm3, %v214_v6, %v205_v58 }
 0x1cf   :  { %v218_v9 = vsel %vm190_vm4, %v216_v8, 0.0  ;;  %v239_v11 = vrot.slane %v184_v4, %v202_v40 }
 0x1d0   :  { %v245_v14 = vsel %vm244_vm5, %v218_v9, 0.0 }
 0x1d1   :  { %246 = vadd.xlane.f32.xlu0 %v245_v14  ;;  %v240_v15 = vsel %vm204_vm1, %v239_v11, %v235_v10 }
 0x1d2   :  { %v241_v16 = vsel %vm215_vm3, %v240_v15, %v231_v7 }
 0x1d3   :  { %v243_v17 = vsel %vm190_vm4, %v241_v16, 0.0 }
 0x1d4   :  { %v258_v18 = vsel %vm244_vm5, %v243_v17, 0.0 }
 0x1d5   :  { %259 = vadd.xlane.f32.xlu1 %v258_v18 }
 0x25e   :  { %v247_v5 = vpop.xlane.xlu0 %246 }
 0x25f   :  { %v248_v19 = vrot.slane %v247_v5, 4 }
 0x261   :  { %v249_v20 = vadd.f32 %v248_v19, %v247_v5 }
 0x262   :  { %v260_v21 = vpop.xlane.xlu1 %259 }
 0x263   :  { %v250_v22 = vrot.slane %v249_v20, 2  ;;  %v261_v23 = vrot.slane %v260_v21, 4 }
 0x265   :  { %v262_v24 = vadd.f32 %v261_v23, %v260_v21  ;;  %v251_v12 = vadd.f32 %v250_v22, %v249_v20 }
 0x267   :  { %v263_v25 = vrot.slane %v262_v24, 2  ;;  %v252_v26 = vrot.slane %v251_v12, 1 }
 0x269   :  { %v264_v27 = vadd.f32 %v263_v25, %v262_v24  ;;  %v253_v28 = vadd.f32 %v252_v26, %v251_v12 }
 0x26b   :  { %306 = vpush %v253_v28  ;;  %v265_v29 = vrot.slane %v264_v27, 1 }
 0x26d   :  { %v266_v30 = vadd.f32 %v265_v29, %v264_v27 }
 0x26f   :  { %308 = vpush %v266_v30 }
 0x29c   :  { %s307_s24 = spop %306 }
 0x29d   :  { %v255_v31 = vstv %s307_s24 }
 0x29e   :  { %257 = vst.msk [vmem:[#allocation2] sm:$0x1] %vm256_vm6, %v255_v31 }
 0x29f   :  { %324 = shalt.err (!%p321_p4)
}
 0x2a0   :  { %s325_s4 = scalar_lea.hbm %s466_s2, 16 }
 0x2a1   :  { %p326_p5 = scmp.ne.s32.totalorder %s466_s2, %s325_s4  ;;  %p329_p6 = scmp.lt.u32.totalorder %s325_s4, %s466_s2 }
 0x2a3   :  { %p331_p7 = pnand %p329_p6, %p326_p5 }
 0x2a5   :  { %334 = shalt.err (!%p331_p7)
}
 0x2a6   :  { %279 = dma.vmem_to_hbm [thread:$0]  %s277_s23, 16, %s466_s2, [#allocation3]  }
 0x2a7   :  { %s309_s11 = spop %308  ;;  %s335_s12 = scalar_lea.vmem %s287_s26, 16 }
 0x2a8   :  { %v268_v32 = vstv %s309_s11  ;;  %p336_p8 = scmp.ne.s32.totalorder %s287_s26, %s335_s12  ;;  %s339_s13 = scalar_lea.vmem %s287_s26, 32 }
 0x2a9   :  { %269 = vst.msk [vmem:[#allocation4] sm:$0x1] %vm256_vm6, %v268_v32  ;;  %p340_p9 = scmp.lt.s32.totalorder %s287_s26, %s287_s26  ;;  %p341_p10 = scmp.lt.s32.totalorder %s339_s13, %s335_s12 }
 0x2ab   :  { %p342_p11 = por %p341_p10, %p340_p9 }
 0x2ad   :  { %p343_p12 = pnand %p342_p11, %p336_p8 }
 0x2af   :  { %346 = shalt.err (!%p343_p12)
}
 0x2b0   :  { %s347_s16 = scalar_lea.hbm %s467_s3, 16 }
 0x2b1   :  { %p348_p13 = scmp.ne.s32.totalorder %s467_s3, %s347_s16  ;;  %p351_p0 = scmp.lt.u32.totalorder %s347_s16, %s467_s3 }
 0x2b3   :  { %p353_p1 = pnand %p351_p0, %p348_p13 }
 0x2b5   :  { %356 = shalt.err (!%p353_p1)
}
 0x2b6   :  { %289 = dma.vmem_to_hbm [thread:$0]  %s287_s26, 16, %s467_s3, [#allocation5]  }
 0x2b7   :  { %357 = dma.done.wait [#allocation3], 16  }
 0x2b8   :  { %358 = vsyncadd [#allocation3], 4294967280 }
 0x2b9   :  { %359 = dma.done.wait [#allocation5], 16  }
 0x2ba   :  { %360 = vsyncadd [#allocation5], 4294967280 }
 0x2bb   :  { %296 = vsyncpa [#allocation3], 1 }
 0x2bc   :  { %297 = vsyncpa [#allocation5], 1 }

</bundles_post_ra>
